<compile_context>
chip_gen: v5e
topology: v5e:2x2
jax: 0.10.0
libtpu: 0.0.40
codegen_flags: <defaults>
</compile_context>

<pallas_src>
import functools

import jax
import jax.numpy as jnp
from jax.experimental import pallas as pl
from jax.experimental.pallas import tpu as pltpu

LANE = 128  # channel padding target (TPU lane width)


# ----------------------------------------------------------------------------
# Fused Pallas kernel: the entire TCN + linear head for Bb folded sequences.
# ----------------------------------------------------------------------------
def _fused_tcn_kernel(*refs, block_cfg, n_params, seq_len):
    """refs = (x_ref, *param_refs, o_ref).

    x_ref : (M, LANE)   folded activations, M = rows_per_step * seq_len,
                        channels-last, already in the MXU operand dtype.
    params: per block  w1,b1,w2,b2[,wd,bd]  then  lw,lb
            weights (K*LANE, LANE) in the MXU operand dtype (taps stacked
            along the contraction axis), biases (1, LANE) f32.
    o_ref : (M, LANE)   lane-dense logits (f32).
    """
    x_ref = refs[0]
    p_refs = refs[1:1 + n_params]
    o_ref = refs[1 + n_params]

    M, lane = x_ref.shape
    cdt = p_refs[0].dtype  # MXU operand dtype (bf16 default, f32 exact path)

    # Time index of every row within its own folded sequence.  Used to zero
    # the causal-pad positions after each tap roll; the rolled-in (wrapped /
    # cross-sequence) rows are exactly the rows that must be zero.
    n_seq = M // seq_len
    t_idx = jax.lax.broadcasted_iota(
        jnp.int32, (n_seq, seq_len, lane), 1).reshape(M, lane)

    def shifted_tap(x_f32, s):
        # Causal shift by s rows within each sequence: out[t] = x[t - s],
        # zeros for t < s.  Roll runs on the XLU, mask on the VPU: no VMEM
        # scratch round-trip and no sublane-misaligned loads.
        if s >= seq_len:
            return jnp.zeros((M, lane), cdt)
        rolled = pltpu.roll(x_f32, shift=s, axis=0)
        return jnp.where(t_idx >= s, rolled, 0.0).astype(cdt)

    def conv(x_f32, x_cdt, w_ref, b_ref, dilation, relu):
        """Dilated causal conv1d as ONE MXU matmul (taps fused along K*lane)."""
        K = w_ref.shape[0] // lane
        if K == 1:
            op = x_cdt                                     # 1x1 conv / head
        else:
            taps = [x_cdt if (K - 1 - k) * dilation == 0
                    else shifted_tap(x_f32, (K - 1 - k) * dilation)
                    for k in range(K)]
            op = jnp.concatenate(taps, axis=-1)            # (M, K*lane)
        acc = jnp.dot(op, w_ref[...], preferred_element_type=jnp.float32)
        acc = acc + b_ref[...]                             # (1, lane) f32 bias
        return jnp.maximum(acc, 0.0) if relu else acc

    x = x_ref[...].astype(jnp.float32)  # f32 residual carrier, stays on-chip
    pi = 0
    for dilation, has_ds in block_cfg:
        w1, b1, w2, b2 = p_refs[pi:pi + 4]
        pi += 4
        x_cdt = x.astype(cdt)                       # one cast: conv1 + downsample
        h = conv(x, x_cdt, w1, b1, dilation, True)  # conv1 + ReLU (dropout = id)
        h = conv(h, h.astype(cdt), w2, b2, dilation, True)   # conv2 + ReLU
        if has_ds:
            wd, bd = p_refs[pi:pi + 2]
            pi += 2
            res = conv(x, x_cdt, wd, bd, 1, False)  # 1x1 downsample on residual
        else:
            res = x
        x = jnp.maximum(h + res, 0.0)               # fused residual add + ReLU

    lw, lb = p_refs[pi:pi + 2]
    logits = conv(x, x.astype(cdt), lw, lb, 1, False)   # Linear head == 1x1 conv
    o_ref[...] = logits.astype(o_ref.dtype)


# ----------------------------------------------------------------------------
# Param preparation: pad channels to 128 lanes, fuse taps along the
# contraction axis, cast weights to the MXU operand dtype.
# ----------------------------------------------------------------------------
def prepare_params(params, compute_dtype=jnp.bfloat16, lane=LANE):
    def pad_w(w):  # (K, Cin, Cout) -> (K*lane, lane), compute_dtype
        K, ci, co = w.shape
        wp = jnp.zeros((K, lane, lane), compute_dtype)
        wp = wp.at[:, :ci, :co].set(w.astype(compute_dtype))
        return wp.reshape(K * lane, lane)

    def pad_b(b):  # (Cout,) -> (1, lane), f32 (bias/ReLU/residual stay in f32)
        return (jnp.zeros((1, lane), jnp.float32)
                .at[0, :b.shape[0]].set(b.astype(jnp.float32)))

    flat, cfg = [], []
    for i, blk in enumerate(params["blocks"]):
        d = 2 ** i
        flat += [pad_w(blk["w1"]), pad_b(blk["b1"]),
                 pad_w(blk["w2"]), pad_b(blk["b2"])]
        has_ds = "wd" in blk
        if has_ds:
            flat += [pad_w(blk["wd"]), pad_b(blk["bd"])]
        cfg.append((d, has_ds))
    flat += [pad_w(params["linear_w"][None]), pad_b(params["linear_b"])]
    return tuple(flat), tuple(cfg)


# ----------------------------------------------------------------------------
# Forward wrapper (equivalent of TcnClassifier.forward, return_feats=False)
# ----------------------------------------------------------------------------
def _pick_rows_per_step(batch):
    # Largest per-step sequence fold that still leaves >= 2 grid steps, so
    # both v7x TensorCores get work while v5e/v6e amortize per-step overhead.
    for bb in range(batch // 2, 0, -1):
        if batch % bb == 0:
            return bb
    return 1


def tcn_classifier_forward(x_nct, flat_params, block_cfg, out_set_size,
                           rows_per_step=None, lane=LANE):
    """x_nct: (B, input_dim, T) -> logits (B, T, out_set_size)."""
    B, Cin, T = x_nct.shape
    cdt = flat_params[0].dtype  # MXU operand dtype

    # One-time layout glue: NCT -> channels-last, pad channels to the lane
    # width, fold (B, T) into one lane-dense M axis, feed in the operand dtype.
    x = jnp.transpose(x_nct, (0, 2, 1))
    x = jnp.pad(x, ((0, 0), (0, 0), (0, lane - Cin)))
    x = x.reshape(B * T, lane).astype(cdt)

    Bb = rows_per_step if rows_per_step is not None else _pick_rows_per_step(B)
    sub = 16 if cdt == jnp.bfloat16 else 8
    if B % Bb != 0 or (Bb * T) % sub != 0:
        Bb = B  # full-array block is always a legal block shape
    Mb = Bb * T
    grid = (B // Bb,)

    n_params = len(flat_params)
    kernel = functools.partial(_fused_tcn_kernel, block_cfg=block_cfg,
                               n_params=n_params, seq_len=T)

    in_specs = [pl.BlockSpec((Mb, lane), lambda i: (i, 0))]
    for p in flat_params:
        # Grid-invariant blocks: DMA'd once and revisited across grid steps.
        in_specs.append(pl.BlockSpec(p.shape, lambda i: (0, 0)))

    # Scoped VMEM limit sized from the actual footprint (with headroom)
    # instead of the 16/32 MiB default; capped at v7x's 64 MiB physical VMEM.
    params_bytes = sum(int(p.size) * p.dtype.itemsize for p in flat_params)
    io_bytes = Mb * lane * (cdt.itemsize + 4)          # in (cdt) + out (f32)
    work_bytes = 16 * Mb * lane * 4                    # f32 intermediates
    vmem_limit = int(2 * params_bytes + 2 * io_bytes + work_bytes) + (8 << 20)
    vmem_limit = min(64 << 20, max(vmem_limit, 16 << 20))

    out = pl.pallas_call(
        kernel,
        out_shape=jax.ShapeDtypeStruct((B * T, lane), jnp.float32),
        grid=grid,
        in_specs=in_specs,
        out_specs=pl.BlockSpec((Mb, lane), lambda i: (i, 0)),
        compiler_params=pltpu.CompilerParams(
            dimension_semantics=("parallel",),
            vmem_limit_bytes=vmem_limit),
    )(x, *flat_params)

    # Lane-dense (M, 128) store; slice the real logits back out.
    return out.reshape(B, T, lane)[..., :out_set_size]


# ----------------------------------------------------------------------------
# Deterministic parameter init (synthetic; shapes match the torch module)
# ----------------------------------------------------------------------------
def init_params(key, input_dim, tcn_channels, out_set_size, kernel_size):
    params = {"blocks": []}
    in_ch = input_dim
    for out_ch in tcn_channels:
        key, k1, k2, k3, k4, k5, k6 = jax.random.split(key, 7)
        blk = {
            "w1": 0.3 * jax.random.normal(k1, (kernel_size, in_ch, out_ch), jnp.float32),
            "b1": 0.1 * jax.random.normal(k2, (out_ch,), jnp.float32),
            "w2": 0.3 * jax.random.normal(k3, (kernel_size, out_ch, out_ch), jnp.float32),
            "b2": 0.1 * jax.random.normal(k4, (out_ch,), jnp.float32),
        }
        if in_ch != out_ch:  # 1x1 downsample on the residual path
            blk["wd"] = 0.3 * jax.random.normal(k5, (1, in_ch, out_ch), jnp.float32)
            blk["bd"] = 0.1 * jax.random.normal(k6, (out_ch,), jnp.float32)
        params["blocks"].append(blk)
        in_ch = out_ch
    key, kw, kb = jax.random.split(key, 3)
    params["linear_w"] = 0.3 * jax.random.normal(kw, (in_ch, out_set_size), jnp.float32)
    params["linear_b"] = 0.1 * jax.random.normal(kb, (out_set_size,), jnp.float32)
    return params


# ----------------------------------------------------------------------------
# Pure-JAX reference (correctness check only; mirrors the torch module's math)
# ----------------------------------------------------------------------------
def _ref_conv(x, w, b, dilation, relu, compute_dtype):
    B, T, _ = x.shape
    K = w.shape[0]
    pad = (K - 1) * dilation
    xp = jnp.pad(x, ((0, 0), (pad, 0), (0, 0))).astype(compute_dtype)
    wc = w.astype(compute_dtype)
    y = sum(
        jnp.einsum("btc,co->bto", xp[:, k * dilation:k * dilation + T, :], wc[k],
                   preferred_element_type=jnp.float32)
        for k in range(K)
    ) + b.astype(jnp.float32)
    return jnp.maximum(y, 0.0) if relu else y


def ref_forward(x_nct, params, compute_dtype=jnp.float32):
    x = jnp.transpose(x_nct, (0, 2, 1))
    for i, blk in enumerate(params["blocks"]):
        d = 2 ** i
        out = _ref_conv(x, blk["w1"], blk["b1"], d, True, compute_dtype)
        out = _ref_conv(out, blk["w2"], blk["b2"], d, True, compute_dtype)
        res = (_ref_conv(x, blk["wd"], blk["bd"], 1, False, compute_dtype)
               if "wd" in blk else x)
        x = jnp.maximum(out + res, 0.0)
    return _ref_conv(x, params["linear_w"][None], params["linear_b"], 1, False,
                     compute_dtype)


# ----------------------------------------------------------------------------
if __name__ == "__main__":
    B, T = 4, 16
    input_dim = 6          # IMU channels
    tcn_channels = (8, 16)
    out_set_size = 5
    kernel_size = 2

    key = jax.random.PRNGKey(0)
    kx, kp = jax.random.split(key)
    x_nct = jax.random.normal(kx, (B, input_dim, T), jnp.float32)
    params = init_params(kp, input_dim, tcn_channels, out_set_size, kernel_size)

    # --- f32 MXU operands: exact check against the f32 reference -----------
    flat32, cfg32 = prepare_params(params, compute_dtype=jnp.float32)
    fwd32 = jax.jit(lambda x: tcn_classifier_forward(x, flat32, cfg32, out_set_size))
    logits32 = jax.block_until_ready(fwd32(x_nct))
    assert logits32.shape == (B, T, out_set_size), logits32.shape
    ref32 = ref_forward(x_nct, params, compute_dtype=jnp.float32)
    if not jnp.allclose(logits32, ref32, atol=5e-4, rtol=5e-4):
        raise AssertionError("Pallas f32 output does not match f32 reference")

    # --- bf16 MXU operands (default path, all gens incl. v5e), f32 accum ----
    flat16, cfg16 = prepare_params(params)  # bf16 default
    fwd16 = jax.jit(lambda x: tcn_classifier_forward(x, flat16, cfg16, out_set_size))
    logits16 = jax.block_until_ready(fwd16(x_nct))
    ref16 = ref_forward(x_nct, params, compute_dtype=jnp.bfloat16)
    if not jnp.allclose(logits16, ref16, atol=2e-2, rtol=2e-2):
        raise AssertionError("Pallas bf16 output does not match bf16 reference")

    print("KERNEL_OK")
</pallas_src>

<mosaic_0001>
module attributes {stable_mosaic.version = 11 : i64} {
  func.func @_fused_tcn_kernel(%arg0: i32, %arg1: memref<32x128xf32, #tpu.memory_space<vmem>>, %arg2: memref<256x128xf32, #tpu.memory_space<vmem>>, %arg3: memref<1x128xf32, #tpu.memory_space<vmem>>, %arg4: memref<256x128xf32, #tpu.memory_space<vmem>>, %arg5: memref<1x128xf32, #tpu.memory_space<vmem>>, %arg6: memref<128x128xf32, #tpu.memory_space<vmem>>, %arg7: memref<1x128xf32, #tpu.memory_space<vmem>>, %arg8: memref<256x128xf32, #tpu.memory_space<vmem>>, %arg9: memref<1x128xf32, #tpu.memory_space<vmem>>, %arg10: memref<256x128xf32, #tpu.memory_space<vmem>>, %arg11: memref<1x128xf32, #tpu.memory_space<vmem>>, %arg12: memref<128x128xf32, #tpu.memory_space<vmem>>, %arg13: memref<1x128xf32, #tpu.memory_space<vmem>>, %arg14: memref<128x128xf32, #tpu.memory_space<vmem>>, %arg15: memref<1x128xf32, #tpu.memory_space<vmem>>, %arg16: memref<32x128xf32, #tpu.memory_space<vmem>>) attributes {dimension_semantics = [#tpu.dimension_semantics<parallel>], iteration_bounds = array<i64: 2>, scalar_prefetch = 0 : i64, scratch_operands = 0 : i64, tpu.core_type = #tpu.core_type<tc>, window_params = [{transform_indices = @transform_0, window_bounds = array<i64: 32, 128>}, {pipeline_mode = #tpu.pipeline_mode<synchronous>, transform_indices = @transform_1, window_bounds = array<i64: 256, 128>}, {pipeline_mode = #tpu.pipeline_mode<synchronous>, transform_indices = @transform_2, window_bounds = array<i64: 1, 128>}, {pipeline_mode = #tpu.pipeline_mode<synchronous>, transform_indices = @transform_3, window_bounds = array<i64: 256, 128>}, {pipeline_mode = #tpu.pipeline_mode<synchronous>, transform_indices = @transform_4, window_bounds = array<i64: 1, 128>}, {pipeline_mode = #tpu.pipeline_mode<synchronous>, transform_indices = @transform_5, window_bounds = array<i64: 128, 128>}, {pipeline_mode = #tpu.pipeline_mode<synchronous>, transform_indices = @transform_6, window_bounds = array<i64: 1, 128>}, {pipeline_mode = #tpu.pipeline_mode<synchronous>, transform_indices = @transform_7, window_bounds = array<i64: 256, 128>}, {pipeline_mode = #tpu.pipeline_mode<synchronous>, transform_indices = @transform_8, window_bounds = array<i64: 1, 128>}, {pipeline_mode = #tpu.pipeline_mode<synchronous>, transform_indices = @transform_9, window_bounds = array<i64: 256, 128>}, {pipeline_mode = #tpu.pipeline_mode<synchronous>, transform_indices = @transform_10, window_bounds = array<i64: 1, 128>}, {pipeline_mode = #tpu.pipeline_mode<synchronous>, transform_indices = @transform_11, window_bounds = array<i64: 128, 128>}, {pipeline_mode = #tpu.pipeline_mode<synchronous>, transform_indices = @transform_12, window_bounds = array<i64: 1, 128>}, {pipeline_mode = #tpu.pipeline_mode<synchronous>, transform_indices = @transform_13, window_bounds = array<i64: 128, 128>}, {pipeline_mode = #tpu.pipeline_mode<synchronous>, transform_indices = @transform_14, window_bounds = array<i64: 1, 128>}, {transform_indices = @transform_15, window_bounds = array<i64: 32, 128>}]} {
    %0 = tpu.iota {dimensions = array<i32: 1>} : vector<2x16x128xi32>
    %1 = vector.shape_cast %0 : vector<2x16x128xi32> to vector<32x128xi32>
    %c0 = arith.constant 0 : index
    %c0_0 = arith.constant 0 : index
    %2 = vector.load %arg1[%c0, %c0_0] : memref<32x128xf32, #tpu.memory_space<vmem>>, vector<32x128xf32>
    %c1_i32 = arith.constant 1 : i32
    %3 = tpu.dynamic_rotate %2 by %c1_i32 dim 0 : vector<32x128xf32>, i32 -> vector<32x128xf32>
    %c1_i32_1 = arith.constant 1 : i32
    %4 = vector.broadcast %c1_i32_1 : i32 to vector<32x128xi32>
    %5 = arith.cmpi sge, %1, %4 : vector<32x128xi32>
    %cst = arith.constant 0.000000e+00 : f32
    %6 = vector.broadcast %cst : f32 to vector<32x128xf32>
    %7 = arith.select %5, %3, %6 : vector<32x128xi1>, vector<32x128xf32>
    %8 = tpu.concatenate %7, %2 in 1 : vector<32x128xf32>, vector<32x128xf32> -> vector<32x256xf32>
    %c0_2 = arith.constant 0 : index
    %c0_3 = arith.constant 0 : index
    %9 = vector.load %arg2[%c0_2, %c0_3] : memref<256x128xf32, #tpu.memory_space<vmem>>, vector<256x128xf32>
    %cst_4 = arith.constant dense<0.000000e+00> : vector<32x128xf32>
    %10 = tpu.matmul %8, %9, %cst_4 {dimension_numbers = #tpu.dot_dimension_numbers<[1], [0], [0], [1], [0, 0, 1, 1], [], []>} : vector<32x256xf32>, vector<256x128xf32>, vector<32x128xf32> -> vector<32x128xf32>
    %c0_5 = arith.constant 0 : index
    %c0_6 = arith.constant 0 : index
    %11 = vector.load %arg3[%c0_5, %c0_6] : memref<1x128xf32, #tpu.memory_space<vmem>>, vector<1x128xf32>
    %12 = vector.broadcast %11 : vector<1x128xf32> to vector<32x128xf32>
    %13 = arith.addf %10, %12 : vector<32x128xf32>
    %cst_7 = arith.constant 0.000000e+00 : f32
    %14 = vector.broadcast %cst_7 : f32 to vector<32x128xf32>
    %15 = arith.maximumf %13, %14 : vector<32x128xf32>
    %c1_i32_8 = arith.constant 1 : i32
    %16 = tpu.dynamic_rotate %15 by %c1_i32_8 dim 0 : vector<32x128xf32>, i32 -> vector<32x128xf32>
    %c1_i32_9 = arith.constant 1 : i32
    %17 = vector.broadcast %c1_i32_9 : i32 to vector<32x128xi32>
    %18 = arith.cmpi sge, %1, %17 : vector<32x128xi32>
    %cst_10 = arith.constant 0.000000e+00 : f32
    %19 = vector.broadcast %cst_10 : f32 to vector<32x128xf32>
    %20 = arith.select %18, %16, %19 : vector<32x128xi1>, vector<32x128xf32>
    %21 = tpu.concatenate %20, %15 in 1 : vector<32x128xf32>, vector<32x128xf32> -> vector<32x256xf32>
    %c0_11 = arith.constant 0 : index
    %c0_12 = arith.constant 0 : index
    %22 = vector.load %arg4[%c0_11, %c0_12] : memref<256x128xf32, #tpu.memory_space<vmem>>, vector<256x128xf32>
    %cst_13 = arith.constant dense<0.000000e+00> : vector<32x128xf32>
    %23 = tpu.matmul %21, %22, %cst_13 {dimension_numbers = #tpu.dot_dimension_numbers<[1], [0], [0], [1], [0, 0, 1, 1], [], []>} : vector<32x256xf32>, vector<256x128xf32>, vector<32x128xf32> -> vector<32x128xf32>
    %c0_14 = arith.constant 0 : index
    %c0_15 = arith.constant 0 : index
    %24 = vector.load %arg5[%c0_14, %c0_15] : memref<1x128xf32, #tpu.memory_space<vmem>>, vector<1x128xf32>
    %25 = vector.broadcast %24 : vector<1x128xf32> to vector<32x128xf32>
    %26 = arith.addf %23, %25 : vector<32x128xf32>
    %cst_16 = arith.constant 0.000000e+00 : f32
    %27 = vector.broadcast %cst_16 : f32 to vector<32x128xf32>
    %28 = arith.maximumf %26, %27 : vector<32x128xf32>
    %c0_17 = arith.constant 0 : index
    %c0_18 = arith.constant 0 : index
    %29 = vector.load %arg6[%c0_17, %c0_18] : memref<128x128xf32, #tpu.memory_space<vmem>>, vector<128x128xf32>
    %cst_19 = arith.constant dense<0.000000e+00> : vector<32x128xf32>
    %30 = tpu.matmul %2, %29, %cst_19 {dimension_numbers = #tpu.dot_dimension_numbers<[1], [0], [0], [1], [0, 0, 1, 1], [], []>} : vector<32x128xf32>, vector<128x128xf32>, vector<32x128xf32> -> vector<32x128xf32>
    %c0_20 = arith.constant 0 : index
    %c0_21 = arith.constant 0 : index
    %31 = vector.load %arg7[%c0_20, %c0_21] : memref<1x128xf32, #tpu.memory_space<vmem>>, vector<1x128xf32>
    %32 = vector.broadcast %31 : vector<1x128xf32> to vector<32x128xf32>
    %33 = arith.addf %30, %32 : vector<32x128xf32>
    %34 = arith.addf %28, %33 : vector<32x128xf32>
    %cst_22 = arith.constant 0.000000e+00 : f32
    %35 = vector.broadcast %cst_22 : f32 to vector<32x128xf32>
    %36 = arith.maximumf %34, %35 : vector<32x128xf32>
    %c2_i32 = arith.constant 2 : i32
    %37 = tpu.dynamic_rotate %36 by %c2_i32 dim 0 : vector<32x128xf32>, i32 -> vector<32x128xf32>
    %c2_i32_23 = arith.constant 2 : i32
    %38 = vector.broadcast %c2_i32_23 : i32 to vector<32x128xi32>
    %39 = arith.cmpi sge, %1, %38 : vector<32x128xi32>
    %cst_24 = arith.constant 0.000000e+00 : f32
    %40 = vector.broadcast %cst_24 : f32 to vector<32x128xf32>
    %41 = arith.select %39, %37, %40 : vector<32x128xi1>, vector<32x128xf32>
    %42 = tpu.concatenate %41, %36 in 1 : vector<32x128xf32>, vector<32x128xf32> -> vector<32x256xf32>
    %c0_25 = arith.constant 0 : index
    %c0_26 = arith.constant 0 : index
    %43 = vector.load %arg8[%c0_25, %c0_26] : memref<256x128xf32, #tpu.memory_space<vmem>>, vector<256x128xf32>
    %cst_27 = arith.constant dense<0.000000e+00> : vector<32x128xf32>
    %44 = tpu.matmul %42, %43, %cst_27 {dimension_numbers = #tpu.dot_dimension_numbers<[1], [0], [0], [1], [0, 0, 1, 1], [], []>} : vector<32x256xf32>, vector<256x128xf32>, vector<32x128xf32> -> vector<32x128xf32>
    %c0_28 = arith.constant 0 : index
    %c0_29 = arith.constant 0 : index
    %45 = vector.load %arg9[%c0_28, %c0_29] : memref<1x128xf32, #tpu.memory_space<vmem>>, vector<1x128xf32>
    %46 = vector.broadcast %45 : vector<1x128xf32> to vector<32x128xf32>
    %47 = arith.addf %44, %46 : vector<32x128xf32>
    %cst_30 = arith.constant 0.000000e+00 : f32
    %48 = vector.broadcast %cst_30 : f32 to vector<32x128xf32>
    %49 = arith.maximumf %47, %48 : vector<32x128xf32>
    %c2_i32_31 = arith.constant 2 : i32
    %50 = tpu.dynamic_rotate %49 by %c2_i32_31 dim 0 : vector<32x128xf32>, i32 -> vector<32x128xf32>
    %c2_i32_32 = arith.constant 2 : i32
    %51 = vector.broadcast %c2_i32_32 : i32 to vector<32x128xi32>
    %52 = arith.cmpi sge, %1, %51 : vector<32x128xi32>
    %cst_33 = arith.constant 0.000000e+00 : f32
    %53 = vector.broadcast %cst_33 : f32 to vector<32x128xf32>
    %54 = arith.select %52, %50, %53 : vector<32x128xi1>, vector<32x128xf32>
    %55 = tpu.concatenate %54, %49 in 1 : vector<32x128xf32>, vector<32x128xf32> -> vector<32x256xf32>
    %c0_34 = arith.constant 0 : index
    %c0_35 = arith.constant 0 : index
    %56 = vector.load %arg10[%c0_34, %c0_35] : memref<256x128xf32, #tpu.memory_space<vmem>>, vector<256x128xf32>
    %cst_36 = arith.constant dense<0.000000e+00> : vector<32x128xf32>
    %57 = tpu.matmul %55, %56, %cst_36 {dimension_numbers = #tpu.dot_dimension_numbers<[1], [0], [0], [1], [0, 0, 1, 1], [], []>} : vector<32x256xf32>, vector<256x128xf32>, vector<32x128xf32> -> vector<32x128xf32>
    %c0_37 = arith.constant 0 : index
    %c0_38 = arith.constant 0 : index
    %58 = vector.load %arg11[%c0_37, %c0_38] : memref<1x128xf32, #tpu.memory_space<vmem>>, vector<1x128xf32>
    %59 = vector.broadcast %58 : vector<1x128xf32> to vector<32x128xf32>
    %60 = arith.addf %57, %59 : vector<32x128xf32>
    %cst_39 = arith.constant 0.000000e+00 : f32
    %61 = vector.broadcast %cst_39 : f32 to vector<32x128xf32>
    %62 = arith.maximumf %60, %61 : vector<32x128xf32>
    %c0_40 = arith.constant 0 : index
    %c0_41 = arith.constant 0 : index
    %63 = vector.load %arg12[%c0_40, %c0_41] : memref<128x128xf32, #tpu.memory_space<vmem>>, vector<128x128xf32>
    %cst_42 = arith.constant dense<0.000000e+00> : vector<32x128xf32>
    %64 = tpu.matmul %36, %63, %cst_42 {dimension_numbers = #tpu.dot_dimension_numbers<[1], [0], [0], [1], [0, 0, 1, 1], [], []>} : vector<32x128xf32>, vector<128x128xf32>, vector<32x128xf32> -> vector<32x128xf32>
    %c0_43 = arith.constant 0 : index
    %c0_44 = arith.constant 0 : index
    %65 = vector.load %arg13[%c0_43, %c0_44] : memref<1x128xf32, #tpu.memory_space<vmem>>, vector<1x128xf32>
    %66 = vector.broadcast %65 : vector<1x128xf32> to vector<32x128xf32>
    %67 = arith.addf %64, %66 : vector<32x128xf32>
    %68 = arith.addf %62, %67 : vector<32x128xf32>
    %cst_45 = arith.constant 0.000000e+00 : f32
    %69 = vector.broadcast %cst_45 : f32 to vector<32x128xf32>
    %70 = arith.maximumf %68, %69 : vector<32x128xf32>
    %c0_46 = arith.constant 0 : index
    %c0_47 = arith.constant 0 : index
    %71 = vector.load %arg14[%c0_46, %c0_47] : memref<128x128xf32, #tpu.memory_space<vmem>>, vector<128x128xf32>
    %cst_48 = arith.constant dense<0.000000e+00> : vector<32x128xf32>
    %72 = tpu.matmul %70, %71, %cst_48 {dimension_numbers = #tpu.dot_dimension_numbers<[1], [0], [0], [1], [0, 0, 1, 1], [], []>} : vector<32x128xf32>, vector<128x128xf32>, vector<32x128xf32> -> vector<32x128xf32>
    %c0_49 = arith.constant 0 : index
    %c0_50 = arith.constant 0 : index
    %73 = vector.load %arg15[%c0_49, %c0_50] : memref<1x128xf32, #tpu.memory_space<vmem>>, vector<1x128xf32>
    %74 = vector.broadcast %73 : vector<1x128xf32> to vector<32x128xf32>
    %75 = arith.addf %72, %74 : vector<32x128xf32>
    %c0_51 = arith.constant 0 : index
    %c0_52 = arith.constant 0 : index
    %76 = vector.load %arg16[%c0_51, %c0_52] : memref<32x128xf32, #tpu.memory_space<vmem>>, vector<32x128xf32>
    tpu.vector_store %arg16[%c0_51, %c0_52], %75 {strides = array<i32>} : memref<32x128xf32, #tpu.memory_space<vmem>>, vector<32x128xf32>,
    return
  }
  func.func @transform_0(%arg0: i32) -> (i32, i32) {
    %c0_i32 = arith.constant 0 : i32
    %c0_i32_0 = arith.constant 0 : i32
    return %arg0, %c0_i32 : i32, i32
  }
  func.func @transform_1(%arg0: i32) -> (i32, i32) {
    %c0_i32 = arith.constant 0 : i32
    %c0_i32_0 = arith.constant 0 : i32
    %c0_i32_1 = arith.constant 0 : i32
    return %c0_i32, %c0_i32_0 : i32, i32
  }
  func.func @transform_2(%arg0: i32) -> (i32, i32) {
    %c0_i32 = arith.constant 0 : i32
    %c0_i32_0 = arith.constant 0 : i32
    %c0_i32_1 = arith.constant 0 : i32
    return %c0_i32, %c0_i32_0 : i32, i32
  }
  func.func @transform_3(%arg0: i32) -> (i32, i32) {
    %c0_i32 = arith.constant 0 : i32
    %c0_i32_0 = arith.constant 0 : i32
    %c0_i32_1 = arith.constant 0 : i32
    return %c0_i32, %c0_i32_0 : i32, i32
  }
  func.func @transform_4(%arg0: i32) -> (i32, i32) {
    %c0_i32 = arith.constant 0 : i32
    %c0_i32_0 = arith.constant 0 : i32
    %c0_i32_1 = arith.constant 0 : i32
    return %c0_i32, %c0_i32_0 : i32, i32
  }
  func.func @transform_5(%arg0: i32) -> (i32, i32) {
    %c0_i32 = arith.constant 0 : i32
    %c0_i32_0 = arith.constant 0 : i32
    %c0_i32_1 = arith.constant 0 : i32
    return %c0_i32, %c0_i32_0 : i32, i32
  }
  func.func @transform_6(%arg0: i32) -> (i32, i32) {
    %c0_i32 = arith.constant 0 : i32
    %c0_i32_0 = arith.constant 0 : i32
    %c0_i32_1 = arith.constant 0 : i32
    return %c0_i32, %c0_i32_0 : i32, i32
  }
  func.func @transform_7(%arg0: i32) -> (i32, i32) {
    %c0_i32 = arith.constant 0 : i32
    %c0_i32_0 = arith.constant 0 : i32
    %c0_i32_1 = arith.constant 0 : i32
    return %c0_i32, %c0_i32_0 : i32, i32
  }
  func.func @transform_8(%arg0: i32) -> (i32, i32) {
    %c0_i32 = arith.constant 0 : i32
    %c0_i32_0 = arith.constant 0 : i32
    %c0_i32_1 = arith.constant 0 : i32
    return %c0_i32, %c0_i32_0 : i32, i32
  }
  func.func @transform_9(%arg0: i32) -> (i32, i32) {
    %c0_i32 = arith.constant 0 : i32
    %c0_i32_0 = arith.constant 0 : i32
    %c0_i32_1 = arith.constant 0 : i32
    return %c0_i32, %c0_i32_0 : i32, i32
  }
  func.func @transform_10(%arg0: i32) -> (i32, i32) {
    %c0_i32 = arith.constant 0 : i32
    %c0_i32_0 = arith.constant 0 : i32
    %c0_i32_1 = arith.constant 0 : i32
    return %c0_i32, %c0_i32_0 : i32, i32
  }
  func.func @transform_11(%arg0: i32) -> (i32, i32) {
    %c0_i32 = arith.constant 0 : i32
    %c0_i32_0 = arith.constant 0 : i32
    %c0_i32_1 = arith.constant 0 : i32
    return %c0_i32, %c0_i32_0 : i32, i32
  }
  func.func @transform_12(%arg0: i32) -> (i32, i32) {
    %c0_i32 = arith.constant 0 : i32
    %c0_i32_0 = arith.constant 0 : i32
    %c0_i32_1 = arith.constant 0 : i32
    return %c0_i32, %c0_i32_0 : i32, i32
  }
  func.func @transform_13(%arg0: i32) -> (i32, i32) {
    %c0_i32 = arith.constant 0 : i32
    %c0_i32_0 = arith.constant 0 : i32
    %c0_i32_1 = arith.constant 0 : i32
    return %c0_i32, %c0_i32_0 : i32, i32
  }
  func.func @transform_14(%arg0: i32) -> (i32, i32) {
    %c0_i32 = arith.constant 0 : i32
    %c0_i32_0 = arith.constant 0 : i32
    %c0_i32_1 = arith.constant 0 : i32
    return %c0_i32, %c0_i32_0 : i32, i32
  }
  func.func @transform_15(%arg0: i32) -> (i32, i32) {
    %c0_i32 = arith.constant 0 : i32
    %c0_i32_0 = arith.constant 0 : i32
    return %arg0, %c0_i32 : i32, i32
  }
}

</mosaic_0001>

<bundles_post_ra>
// kernel: _lambda_.1
= control target key start
LH: loop header
LB: loop body
LE: loop exit
PB: predicated region body
PF: predicated region fallthrough
CT: control target
= control target key end

     0   :  { %s2067_s0 = inlined_call_operand.vmem [shape: f32[64,128], index: 0, kind: input, shape index: {}]   ;;  %s2068_s1 = inlined_call_operand.hbm [shape: f32[256,128], index: 1, kind: input, shape index: {}]   ;;  %s2069_s2 = inlined_call_operand.vmem [shape: f32[1,128], index: 2, kind: input, shape index: {}]   ;;  %s2070_s3 = inlined_call_operand.hbm [shape: f32[256,128], index: 3, kind: input, shape index: {}]   ;;  %s2071_s4 = inlined_call_operand.vmem [shape: f32[1,128], index: 4, kind: input, shape index: {}]   ;;  %s2072_s5 = inlined_call_operand.hbm [shape: f32[128,128], index: 5, kind: input, shape index: {}]   ;;  %s2073_s6 = inlined_call_operand.vmem [shape: f32[1,128], index: 6, kind: input, shape index: {}]   ;;  %s2074_s7 = inlined_call_operand.hbm [shape: f32[256,128], index: 7, kind: input, shape index: {}]   ;;  %s2075_s8 = inlined_call_operand.vmem [shape: f32[1,128], index: 8, kind: input, shape index: {}]   ;;  %s2076_s9 = inlined_call_operand.hbm [shape: f32[256,128], index: 9, kind: input, shape index: {}]   ;;  %s2077_s10 = inlined_call_operand.vmem [shape: f32[1,128], index: 10, kind: input, shape index: {}]   ;;  %s2078_s11 = inlined_call_operand.hbm [shape: f32[128,128], index: 11, kind: input, shape index: {}]   ;;  %s2079_s12 = inlined_call_operand.vmem [shape: f32[1,128], index: 12, kind: input, shape index: {}]   ;;  %s2080_s13 = inlined_call_operand.vmem [shape: f32[128,128], index: 13, kind: input, shape index: {}]   ;;  %s2081_s14 = inlined_call_operand.vmem [shape: f32[1,128], index: 14, kind: input, shape index: {}]   ;;  %s2082_s15 = inlined_call_operand.vmem [shape: f32[64,128], index: 15, kind: output, shape index: {}]  }
   0x1   :  { %2084 = sst [smem:[#allocation16_spill]] %s2068_s1 }
   0x2   :  { %2085 = sst [smem:[#allocation17_spill]] %s2070_s3 }
   0x3   :  { %2086 = sst [smem:[#allocation18_spill]] %s2074_s7 }
   0x4   :  { %2087 = sst [smem:[#allocation19_spill]] %s2082_s15 }
   0x5   :  { %20 = vsyncpa [#allocation3], 0 }
   0x6   :  { %21 = vsyncpa [#allocation5], 0 }
   0x7   :  { %22 = vsyncpa [#allocation8], 0 }
   0x8   :  { %23 = vsyncpa [#allocation11], 0  ;;  %s1751_s18 = smov 0  }
   0x9 LB: > { %s2083_s19 = sadd.s32 4294967295, %s1661_s18   ;;  %p1336_p0 = scmp.ge.s32.totalorder %s1661_s18, 1  ;;  %s1661_s18 = sphi %s1751_s18, %s29_s18  }
   0xa   : > { %p380_p1 = scmp.lt.s32.totalorder %s1661_s18, 3  ;;  %p1761_p2 = scmp.eq.s32.totalorder %s2083_s19, 0 }
   0xb   : > { %s2089_s3 = sld [smem:[#allocation17_spill]]  ;;  %s1663_s28 = smov [#allocation4]  }
   0xc   : > { %p1768_p3 = pnand %p1336_p0, %p380_p1  ;;  %s2091_s7 = sld [smem:[#allocation18_spill]] }
   0xd   : > { %s410_s29 = sshll.u32 %s1663_s28, 4  ;;  %s1664_s16 = smov [#allocation7]   ;;  %s411_s29 = int_to_ptr.vmem [resolvable:$true] %s410_s29 }
   0xe   : > { %p1405_p4 = pneg %p1768_p3  ;;  %s444_s17 = sshll.u32 %s1664_s16, 4  ;;  %s445_s17 = int_to_ptr.vmem [resolvable:$true] %s444_s17 }
   0xf   : > { %s2093_s1 = sld [smem:[#allocation16_spill]]  ;;  %s1665_s26 = smov 128  }
  0x10   : > { %p1779_p5 = pnand %p1761_p2, %p1405_p4  ;;  %s1666_s28 = smov 8  }
  0x11   : > { %s408_s23 = sshll.u32 %s2089_s3, 4  ;;  %s1667_s19 = smov [#allocation2]   ;;  %s409_s23 = int_to_ptr.hbm [resolvable:$true] %s408_s23 }
  0x12   : > { %s442_s27 = sshll.u32 %s2091_s7, 4  ;;  %s393_s3 = sshll.u32 %s1667_s19, 4  ;;  %s443_s27 = int_to_ptr.hbm [resolvable:$true] %s442_s27  ;;  %s394_s3 = int_to_ptr.vmem [resolvable:$true] %s393_s3 }
  0x13   : > { %1411 = dma.hbm_to_vmem [thread:$0]  (!%p1779_p5), %s409_s23, 4096, %s411_s29, [#allocation5], %s1665_s26, %s1665_s26, %s1666_s28  }
  0x14   : > { %1417 = dma.hbm_to_vmem [thread:$0]  (!%p1779_p5), %s443_s27, 4096, %s445_s17, [#allocation8], %s1665_s26, %s1665_s26, %s1666_s28  }
  0x15   : > { %s391_s25 = sshll.u32 %s2093_s1, 4  ;;  %s425_s16 = sshll.u32 %s2072_s5, 4  ;;  %s392_s25 = int_to_ptr.hbm [resolvable:$true] %s391_s25  ;;  %s426_s16 = int_to_ptr.hbm [resolvable:$true] %s425_s16 }
  0x16   : > { %1408 = dma.hbm_to_vmem [thread:$0]  (!%p1779_p5), %s392_s25, 4096, %s394_s3, [#allocation3], %s1665_s26, %s1665_s26, %s1666_s28  }
  0x17   : > { %s459_s1 = sshll.u32 %s2076_s9, 4  ;;  %s1668_s23 = smov [#allocation6]   ;;  %s460_s1 = int_to_ptr.hbm [resolvable:$true] %s459_s1 }
  0x18   : > { %s427_s29 = sshll.u32 %s1668_s23, 4  ;;  %s1669_s19 = smov [#allocation9]   ;;  %s428_s29 = int_to_ptr.vmem [resolvable:$true] %s427_s29 }
  0x19   : > { %1414 = dma.hbm_to_vmem [thread:$0]  (!%p1779_p5), %s426_s16, 2048, %s428_s29, [#allocation5], %s1665_s26, %s1665_s26, %s1666_s28  }
  0x1a   : > { %s461_s27 = sshll.u32 %s1669_s19, 4  ;;  %s476_s15 = sshll.u32 %s2078_s11, 4  ;;  %s462_s27 = int_to_ptr.vmem [resolvable:$true] %s461_s27  ;;  %s477_s15 = int_to_ptr.hbm [resolvable:$true] %s476_s15 }
  0x1b   : > { %1420 = dma.hbm_to_vmem [thread:$0]  (!%p1779_p5), %s460_s1, 4096, %s462_s27, [#allocation8], %s1665_s26, %s1665_s26, %s1666_s28  }
  0x1c   : > { %s1670_s3 = smov [#allocation10]   ;;  %512 = sbr.rel (%p1768_p3) target bundleno = 882 (0x372), region = 80 }
  0x1d   : > { %s478_s25 = sshll.u32 %s1670_s3, 4  ;;  %s479_s25 = int_to_ptr.vmem [resolvable:$true] %s478_s25 }
  0x1e   : > { %1423 = dma.hbm_to_vmem [thread:$0]  (!%p1779_p5), %s477_s15, 2048, %s479_s25, [#allocation11], %s1665_s26, %s1665_s26, %s1666_s28  }
  0x21   : > { %1644 = dma.done.wait (%p1761_p2), [#allocation3], 4096  }
  0x22   : > { %1646 = vsyncadd (%p1761_p2), [#allocation3], 4294963200 }
  0x23   : > { %1648 = dma.done.wait (%p1761_p2), [#allocation5], 6144  }
  0x24   : > { %1650 = vsyncadd (%p1761_p2), [#allocation5], 4294961152 }
  0x25   : > { %1652 = dma.done.wait (%p1761_p2), [#allocation8], 8192  }
  0x26   : > { %1654 = vsyncadd (%p1761_p2), [#allocation8], 4294959104 }
  0x27   : > { %1656 = dma.done.wait (%p1761_p2), [#allocation11], 2048  }
  0x28   : > { %1658 = vsyncadd (%p1761_p2), [#allocation11], 4294965248  ;;  %v635_v0 = vld [vmem:[#allocation2 + $0x78] sm:$0xff]  ;;  %v634_v1 = vld [vmem:[#allocation2 + $0x70] sm:$0xff]  ;;  %s2094_s1 = sadd.s32 4294967295, %s1661_s18   ;;  %v598_v22 = vlaneseq  ;;  %s2095_s16 = sld [smem:[#allocation19_spill]] }
  0x29   : > { %v651_v2 = vld [vmem:[#allocation2 + $0xf8] sm:$0xff]  ;;  %656 = vmatpush.msra.mxu0 %v635_v0  ;;  %v650_v3 = vld [vmem:[#allocation2 + $0xf0] sm:$0xff]  ;;  %v633_v4 = vld [vmem:[#allocation2 + $0x68] sm:$0xff]  ;;  %s1351_s24 = sshll.u32 %s2094_s1, 2 }
  0x2a   : > { %685 = vmatpush.msra.mxu1 %v651_v2  ;;  %v649_v5 = vld [vmem:[#allocation2 + $0xe8] sm:$0xff]  ;;  %v632_v6 = vld [vmem:[#allocation2 + $0x60] sm:$0xff]  ;;  %v631_v8 = vld [vmem:[#allocation2 + $0x58] sm:$0xff]  ;;  %p587_p6 = scmp.lt.s32.totalorder %s1351_s24, 7  ;;  %v1837_v27 = vshrl.u32 %v598_v22, 7 }
  0x2b   : > { %657 = vmatpush.msra.mxu0 %v634_v1  ;;  %v648_v7 = vld [vmem:[#allocation2 + $0xe0] sm:$0xff]  ;;  %v647_v9 = vld [vmem:[#allocation2 + $0xd8] sm:$0xff]  ;;  %v630_v10 = vld [vmem:[#allocation2 + $0x50] sm:$0xff] }
  0x2c   : > { %686 = vmatpush.msra.mxu1 %v650_v3  ;;  %v646_v11 = vld [vmem:[#allocation2 + $0xd0] sm:$0xff]  ;;  %v629_v12 = vld [vmem:[#allocation2 + $0x48] sm:$0xff]  ;;  %v628_v14 = vld [vmem:[#allocation2 + $0x40] sm:$0xff]  ;;  %s2097_s24 = smov (!%p587_p6, %s1351_s24), 7  ;;  %vm609_vm0 = vcmp.lt.s32.totalorder %v1837_v27, 1  ;;  %vm614_vm1 = vcmp.ge.s32.totalorder %v1837_v27, 1 }
  0x2d   : > { %658 = vmatpush.msra.mxu0 %v633_v4  ;;  %v645_v13 = vld [vmem:[#allocation2 + $0xc8] sm:$0xff]  ;;  %v627_v15 = vld [vmem:[#allocation2 + $0x38] sm:$0xff]  ;;  %v644_v16 = vld [vmem:[#allocation2 + $0xc0] sm:$0xff]  ;;  %s1352_s20 = sshll.u32 %s2097_s24, 3  ;;  %vm894_vm2 = vcmp.ge.s32.totalorder %v1837_v27, 2  ;;  %vm889_vm3 = vcmp.lt.s32.totalorder %v1837_v27, 2 }
  0x2e   : > { %687 = vmatpush.msra.mxu1 %v649_v5  ;;  %v643_v17 = vld [vmem:[#allocation2 + $0xb8] sm:$0xff]  ;;  %v626_v18 = vld [vmem:[#allocation2 + $0x30] sm:$0xff]  ;;  %v625_v20 = vld [vmem:[#allocation2 + $0x28] sm:$0xff]  ;;  %s1835_s28 = scalar_lea.vmem %s2067_s0, %s1352_s20  ;;  %s596_s21 = scalar_lea.vmem %s2095_s16, %s1352_s20 }
  0x2f   : > { %659 = vmatpush.msra.mxu0 %v632_v6  ;;  %v642_v19 = vld [vmem:[#allocation2 + $0xb0] sm:$0xff]  ;;  %v641_v21 = vld [vmem:[#allocation2 + $0xa8] sm:$0xff]  ;;  %v624_v23 = vld [vmem:[#allocation2 + $0x20] sm:$0xff] }
  0x30   : > { %688 = vmatpush.msra.mxu1 %v648_v7  ;;  %v640_v24 = vld [vmem:[#allocation2 + $0xa0] sm:$0xff]  ;;  %v623_v25 = vld [vmem:[#allocation2 + $0x18] sm:$0xff]  ;;  %v622_v30 = vld [vmem:[#allocation2 + $0x10] sm:$0xff] }
  0x31   : > { %660 = vmatpush.msra.mxu0 %v631_v8  ;;  %v639_v26 = vld [vmem:[#allocation2 + $0x98] sm:$0xff]  ;;  %v1840_v28 = vld [vmem:[%s1835_s28] sm:$0xff]  ;;  %v638_v31 = vld [vmem:[#allocation2 + $0x90] sm:$0xff] }
  0x32   : > { %689 = vmatpush.msra.mxu1 %v647_v9  ;;  %v1843_v29 = vld [vmem:[%s1835_s28 + $0x18] sm:$0xff]  ;;  %v605_v33 = vrot.slane %v1840_v28, 7  ;;  %v760_v35 = vld [vmem:[#allocation4 + $0xf0] sm:$0xff]  ;;  %v621_v36 = vld [vmem:[#allocation2 + $0x8] sm:$0xff] }
  0x33   : > { %661 = vmatpush.msra.mxu0 %v630_v10  ;;  %v761_v32 = vld [vmem:[#allocation4 + $0xf8] sm:$0xff]  ;;  %v608_v34 = vrot.slane %v1843_v29, 7  ;;  %v637_v37 = vld [vmem:[#allocation2 + $0x88] sm:$0xff]  ;;  %v620_v39 = vld [vmem:[#allocation2] sm:$0xff] }
  0x34   : > { %690 = vmatpush.msra.mxu1 %v646_v11  ;;  %795 = vmatpush.msra.mxu3 %v761_v32  ;;  %v759_v38 = vld [vmem:[#allocation4 + $0xe8] sm:$0xff]  ;;  %v636_v40 = vld [vmem:[#allocation2 + $0x80] sm:$0xff]  ;;  %v757_v44 = vld [vmem:[#allocation4 + $0xd8] sm:$0xff] }
  0x35   : > { %662 = vmatpush.msra.mxu0 %v629_v12  ;;  %v613_v41 = vsel %vm609_vm0, %v608_v34, %v605_v33  ;;  %v1852_v42 = vld [vmem:[%s1835_s28 + $0x8] sm:$0xff]  ;;  %v758_v43 = vld [vmem:[#allocation4 + $0xe0] sm:$0xff]  ;;  %v756_v46 = vld [vmem:[#allocation4 + $0xd0] sm:$0xff] }
  0x36   : > { %691 = vmatpush.msra.mxu1 %v645_v13  ;;  %796 = vmatpush.msra.mxu3 %v760_v35  ;;  %v606_v45 = vrot.slane %v1852_v42, 7  ;;  %v755_v47 = vld [vmem:[#allocation4 + $0xc8] sm:$0xff]  ;;  %v1861_v49 = vld [vmem:[%s1835_s28 + $0x10] sm:$0xff]  ;;  %v754_v50 = vld [vmem:[#allocation4 + $0xc0] sm:$0xff] }
  0x37   : > { %663 = vmatpush.msra.mxu0 %v628_v14  ;;  %v753_v51 = vld [vmem:[#allocation4 + $0xb8] sm:$0xff]  ;;  %v607_v52 = vrot.slane %v1861_v49, 7  ;;  %v752_v53 = vld [vmem:[#allocation4 + $0xb0] sm:$0xff]  ;;  %v751_v54 = vld [vmem:[#allocation4 + $0xa8] sm:$0xff] }
  0x38   : > { %692 = vmatpush.msra.mxu1 %v644_v16  ;;  %797 = vmatpush.msra.mxu3 %v759_v38  ;;  %v612_v48 = vsel %vm609_vm0, %v605_v33, %v606_v45  ;;  %v750_v56 = vld [vmem:[#allocation4 + $0xa0] sm:$0xff]  ;;  %v749_v58 = vld [vmem:[#allocation4 + $0x98] sm:$0xff]  ;;  %v748_v59 = vld [vmem:[#allocation4 + $0x90] sm:$0xff] }
  0x39   : > { %664 = vmatpush.msra.mxu0 %v627_v15  ;;  %v611_v55 = vsel %vm609_vm0, %v606_v45, %v607_v52  ;;  %v610_v57 = vsel %vm609_vm0, %v607_v52, %v608_v34  ;;  %v745_v60 = vld [vmem:[#allocation4 + $0x78] sm:$0xff]  ;;  %v747_v61 = vld [vmem:[#allocation4 + $0x88] sm:$0xff]  ;;  %v744_v62 = vld [vmem:[#allocation4 + $0x70] sm:$0xff] }
  0x3a   : > { %693 = vmatpush.msra.mxu1 %v643_v17  ;;  %798 = vmatpush.msra.mxu3 %v758_v43  ;;  %v746_v63 = vld [vmem:[#allocation4 + $0x80] sm:$0xff]  ;;  %v743_v0 = vld [vmem:[#allocation4 + $0x68] sm:$0xff]  ;;  %v741_v2 = vld [vmem:[#allocation4 + $0x58] sm:$0xff] }
  0x3b   : > { %665 = vmatpush.msra.mxu0 %v626_v18  ;;  %766 = vmatpush.msra.mxu2 %v745_v60  ;;  %v742_v1 = vld [vmem:[#allocation4 + $0x60] sm:$0xff]  ;;  %v843_v3 = vld [vmem:[#allocation6 + $0x78] sm:$0xff]  ;;  %v740_v4 = vld [vmem:[#allocation4 + $0x50] sm:$0xff] }
  0x3c   : > { %694 = vmatpush.msra.mxu1 %v642_v19  ;;  %799 = vmatpush.msra.mxu3 %v757_v44  ;;  %v842_v5 = vld [vmem:[#allocation6 + $0x70] sm:$0xff]  ;;  %v739_v6 = vld [vmem:[#allocation4 + $0x48] sm:$0xff]  ;;  %v738_v8 = vld [vmem:[#allocation4 + $0x40] sm:$0xff] }
  0x3d   : > { %666 = vmatpush.msra.mxu0 %v625_v20  ;;  %767 = vmatpush.msra.mxu2 %v744_v62  ;;  %v841_v7 = vld [vmem:[#allocation6 + $0x68] sm:$0xff]  ;;  %v840_v9 = vld [vmem:[#allocation6 + $0x60] sm:$0xff]  ;;  %v737_v10 = vld [vmem:[#allocation4 + $0x38] sm:$0xff] }
  0x3e   : > { %695 = vmatpush.msra.mxu1 %v641_v21  ;;  %800 = vmatpush.msra.mxu3 %v756_v46  ;;  %v839_v11 = vld [vmem:[#allocation6 + $0x58] sm:$0xff]  ;;  %v736_v12 = vld [vmem:[#allocation4 + $0x30] sm:$0xff]  ;;  %v735_v14 = vld [vmem:[#allocation4 + $0x28] sm:$0xff] }
  0x3f   : > { %667 = vmatpush.msra.mxu0 %v624_v23  ;;  %768 = vmatpush.msra.mxu2 %v743_v0  ;;  %v838_v13 = vld [vmem:[#allocation6 + $0x50] sm:$0xff]  ;;  %v837_v15 = vld [vmem:[#allocation6 + $0x48] sm:$0xff]  ;;  %v734_v16 = vld [vmem:[#allocation4 + $0x20] sm:$0xff] }
  0x40   : > { %696 = vmatpush.msra.mxu1 %v640_v24  ;;  %801 = vmatpush.msra.mxu3 %v755_v47  ;;  %v836_v17 = vld [vmem:[#allocation6 + $0x40] sm:$0xff]  ;;  %v733_v18 = vld [vmem:[#allocation4 + $0x18] sm:$0xff]  ;;  %v732_v20 = vld [vmem:[#allocation4 + $0x10] sm:$0xff] }
  0x41   : > { %668 = vmatpush.msra.mxu0 %v623_v25  ;;  %769 = vmatpush.msra.mxu2 %v742_v1  ;;  %v835_v19 = vld [vmem:[#allocation6 + $0x38] sm:$0xff]  ;;  %v1452_v21 = vld [vmem:[%s2069_s2] ss:$0 sm:$0xff]  ;;  %v834_v22 = vld [vmem:[#allocation6 + $0x30] sm:$0xff] }
  0x42   : > { %697 = vmatpush.msra.mxu1 %v639_v26  ;;  %802 = vmatpush.msra.mxu3 %v754_v50  ;;  %v731_v23 = vld [vmem:[#allocation4 + $0x8] sm:$0xff]  ;;  %v730_v25 = vld [vmem:[#allocation4] sm:$0xff]  ;;  %v831_v33 = vld [vmem:[#allocation6 + $0x18] sm:$0xff] }
  0x43   : > { %669 = vmatpush.msra.mxu0 %v622_v30  ;;  %770 = vmatpush.msra.mxu2 %v741_v2  ;;  %v833_v24 = vld [vmem:[#allocation6 + $0x28] sm:$0xff]  ;;  %v832_v32 = vld [vmem:[#allocation6 + $0x20] sm:$0xff]  ;;  %v830_v35 = vld [vmem:[#allocation6 + $0x10] sm:$0xff] }
  0x44   : > { %698 = vmatpush.msra.mxu1 %v638_v31  ;;  %803 = vmatpush.msra.mxu3 %v753_v51  ;;  %v930_v62 = vld [vmem:[#allocation7 + $0xf0] sm:$0xff]  ;;  %v927_v0 = vld [vmem:[#allocation7 + $0xd8] sm:$0xff]  ;;  %v925_v2 = vld [vmem:[#allocation7 + $0xc8] sm:$0xff] }
  0x45   : > { %670 = vmatpush.msra.mxu0 %v621_v36  ;;  %771 = vmatpush.msra.mxu2 %v740_v4  ;;  %v926_v1 = vld [vmem:[#allocation7 + $0xd0] sm:$0xff]  ;;  %v923_v4 = vld [vmem:[#allocation7 + $0xb8] sm:$0xff]  ;;  %v1177_v27 = vld [vmem:[%s2080_s13 + $0x60] sm:$0xff] }
  0x46   : > { %699 = vmatpush.msra.mxu1 %v637_v37  ;;  %804 = vmatpush.msra.mxu3 %v752_v53  ;;  %v829_v37 = vld [vmem:[#allocation6 + $0x8] sm:$0xff] }
  0x47   : > { %671 = vmatpush.msra.mxu0 %v620_v39  ;;  %772 = vmatpush.msra.mxu2 %v739_v6  ;;  %v921_v6 = vld [vmem:[#allocation7 + $0xa8] sm:$0xff] }
  0x48   : > { %700 = vmatpush.msra.mxu1 %v636_v40  ;;  %1355 = vmatmul.msk.f32.vlgmr.msra.gmra.mxu0 %vm614_vm1, %v613_v41  ;;  %v828_v41 = vld [vmem:[#allocation6] sm:$0xff] }
  0x49   : > { %701 = vmatmul.f32.vlgmr.msra.gmra.mxu1 %v1840_v28  ;;  %805 = vmatpush.msra.mxu3 %v751_v54 }
  0x4a   : > { %848 = vmatpush.msrb.mxu0 %v843_v3  ;;  %773 = vmatpush.msra.mxu2 %v738_v8  ;;  %v924_v3 = vld [vmem:[#allocation7 + $0xc0] sm:$0xff]  ;;  %v919_v8 = vld [vmem:[#allocation7 + $0x98] sm:$0xff] }
  0x4b   : > { %806 = vmatpush.msra.mxu3 %v750_v56 }
  0x4c   : > { %849 = vmatpush.msrb.mxu0 %v842_v5  ;;  %774 = vmatpush.msra.mxu2 %v737_v10  ;;  %v922_v5 = vld [vmem:[#allocation7 + $0xb0] sm:$0xff]  ;;  %v915_v10 = vld [vmem:[#allocation7 + $0x78] sm:$0xff] }
  0x4d   : > { %807 = vmatpush.msra.mxu3 %v749_v58  ;;  %936 = vmatpush.msrb.mxu1 %v915_v10 }
  0x4e   : > { %850 = vmatpush.msrb.mxu0 %v841_v7  ;;  %775 = vmatpush.msra.mxu2 %v736_v12  ;;  %v920_v7 = vld [vmem:[#allocation7 + $0xa0] sm:$0xff]  ;;  %v914_v12 = vld [vmem:[#allocation7 + $0x70] sm:$0xff] }
  0x4f   : > { %808 = vmatpush.msra.mxu3 %v748_v59  ;;  %937 = vmatpush.msrb.mxu1 %v914_v12 }
  0x50   : > { %675 = vmatmul.f32.gmra.mxu0 %v612_v48  ;;  %776 = vmatpush.msra.mxu2 %v735_v14  ;;  %v913_v14 = vld [vmem:[#allocation7 + $0x68] sm:$0xff] }
  0x51   : > { %704 = vmatmul.f32.gmra.mxu1 %v1852_v42  ;;  %809 = vmatpush.msra.mxu3 %v747_v61  ;;  %v931_v61 = vld [vmem:[#allocation7 + $0xf8] sm:$0xff] }
  0x52   : > { %851 = vmatpush.msrb.mxu0 %v840_v9  ;;  %777 = vmatpush.msra.mxu2 %v734_v16  ;;  %v918_v9 = vld [vmem:[#allocation7 + $0x90] sm:$0xff]  ;;  %v911_v16 = vld [vmem:[#allocation7 + $0x58] sm:$0xff] }
  0x53   : > { %810 = vmatpush.msra.mxu3 %v746_v63  ;;  %v928_v63 = vld [vmem:[#allocation7 + $0xe0] sm:$0xff]  ;;  %938 = vmatpush.msrb.mxu1 %v913_v14  ;;  %v1110_v14 = vld [vmem:[#allocation10 + $0x10] sm:$0xff] }
  0x54   : > { %852 = vmatpush.msrb.mxu0 %v839_v11  ;;  %778 = vmatpush.msra.mxu2 %v733_v18  ;;  %v917_v11 = vld [vmem:[#allocation7 + $0x88] sm:$0xff] }
  0x55   : > { %v909_v18 = vld [vmem:[#allocation7 + $0x48] sm:$0xff] }
  0x56   : > { %853 = vmatpush.msrb.mxu0 %v838_v13  ;;  %779 = vmatpush.msra.mxu2 %v732_v20  ;;  %v916_v13 = vld [vmem:[#allocation7 + $0x80] sm:$0xff]  ;;  %v907_v20 = vld [vmem:[#allocation7 + $0x38] sm:$0xff] }
  0x58   : > { %1356 = vmatmul.msk.f32.gmra.mxu0 %vm614_vm1, %v611_v55  ;;  %780 = vmatpush.msra.mxu2 %v731_v23  ;;  %v905_v23 = vld [vmem:[#allocation7 + $0x28] sm:$0xff] }
  0x59   : > { %707 = vmatmul.f32.gmra.mxu1 %v1861_v49  ;;  %854 = vmatpush.msrb.mxu0 %v837_v15  ;;  %v912_v15 = vld [vmem:[#allocation7 + $0x60] sm:$0xff] }
  0x5a   : > { %781 = vmatpush.msra.mxu2 %v730_v25  ;;  %939 = vmatpush.msrb.mxu1 %v912_v15  ;;  %v904_v25 = vld [vmem:[#allocation7 + $0x20] sm:$0xff] }
  0x5b   : > { %855 = vmatpush.msrb.mxu0 %v836_v17  ;;  %v910_v17 = vld [vmem:[#allocation7 + $0x50] sm:$0xff] }
  0x5c   : > { %965 = vmatpush.msrb.mxu2 %v931_v61  ;;  %940 = vmatpush.msrb.mxu1 %v911_v16  ;;  %v1116_v61 = vld [vmem:[#allocation10 + $0x40] sm:$0xff]  ;;  %v1109_v16 = vld [vmem:[#allocation10 + $0x8] sm:$0xff] }
  0x5d   : > { %856 = vmatpush.msrb.mxu0 %v835_v19  ;;  %v908_v19 = vld [vmem:[#allocation7 + $0x40] sm:$0xff] }
  0x5e   : > { %966 = vmatpush.msrb.mxu2 %v930_v62  ;;  %941 = vmatpush.msrb.mxu1 %v910_v17 }
  0x5f   : > { %857 = vmatpush.msrb.mxu0 %v834_v22 }
  0x60   : > { %681 = vmatmul.f32.gmra.mxu0 %v610_v57  ;;  %942 = vmatpush.msrb.mxu1 %v909_v18  ;;  %v1108_v18 = vld [vmem:[#allocation10] sm:$0xff] }
  0x61   : > { %710 = vmatmul.f32.gmra.mxu1 %v1843_v29  ;;  %858 = vmatpush.msrb.mxu0 %v833_v24 }
  0x62   : > { %943 = vmatpush.msrb.mxu1 %v908_v19 }
  0x63   : > { %859 = vmatpush.msrb.mxu0 %v832_v32 }
  0x64   : > { %944 = vmatpush.msrb.mxu1 %v907_v20 }
  0x65   : > { %860 = vmatpush.msrb.mxu0 %v831_v33  ;;  %v902_v33 = vld [vmem:[#allocation7 + $0x10] sm:$0xff] }
  0x67   : > { %861 = vmatpush.msrb.mxu0 %v830_v35  ;;  %v901_v35 = vld [vmem:[#allocation7 + $0x8] sm:$0xff] }
  0x69   : > { %862 = vmatpush.msrb.mxu0 %v829_v37 }
  0x6b   : > { %863 = vmatpush.msrb.mxu0 %v828_v41 }
  0x6c   : > { %864 = vmatmul.f32.vlgmr.msrb.gmra.mxu0 %v1840_v28 }
  0x74   : > { %867 = vmatmul.f32.gmra.mxu0 %v1852_v42 }
  0x7c   : > { %870 = vmatmul.f32.gmra.mxu0 %v1861_v49 }
  0x84   : > { %873 = vmatmul.f32.gmra.mxu0 %v1843_v29  ;;  %v929_v29 = vld [vmem:[#allocation7 + $0xe8] sm:$0xff] }
  0x85   : > { %967 = vmatpush.msrb.mxu2 %v929_v29 }
  0x87   : > { %968 = vmatpush.msrb.mxu2 %v928_v63 }
  0x89   : > { %969 = vmatpush.msrb.mxu2 %v927_v0  ;;  %v1115_v0 = vld [vmem:[#allocation10 + $0x38] sm:$0xff] }
  0x8b   : > { %970 = vmatpush.msrb.mxu2 %v926_v1  ;;  %v1114_v1 = vld [vmem:[#allocation10 + $0x30] sm:$0xff] }
  0x8d   : > { %971 = vmatpush.msrb.mxu2 %v925_v2 }
  0x8f   : > { %972 = vmatpush.msrb.mxu2 %v924_v3 }
  0x91   : > { %973 = vmatpush.msrb.mxu2 %v923_v4 }
  0x93   : > { %974 = vmatpush.msrb.mxu2 %v922_v5  ;;  %v1113_v5 = vld [vmem:[#allocation10 + $0x28] sm:$0xff] }
  0x95   : > { %975 = vmatpush.msrb.mxu2 %v921_v6 }
  0x97   : > { %976 = vmatpush.msrb.mxu2 %v920_v7 }
  0x99   : > { %977 = vmatpush.msrb.mxu2 %v919_v8 }
  0x9b   : > { %978 = vmatpush.msrb.mxu2 %v918_v9  ;;  %v1112_v9 = vld [vmem:[#allocation10 + $0x20] sm:$0xff] }
  0x9d   : > { %979 = vmatpush.msrb.mxu2 %v917_v11 }
  0x9f   : > { %980 = vmatpush.msrb.mxu2 %v916_v13  ;;  %v1111_v13 = vld [vmem:[#allocation10 + $0x18] sm:$0xff] }
  0xc5   : > { %v673_v26 = vpop.f32.mrf.mxu0 }
  0xc6   : > { %v702_v30 = vpop.f32.mrf.mxu1  ;;  %v674_v31 = vadd.f32 %v1452_v21, %v673_v26  ;;  %v1453_v26 = vld [vmem:[%s2071_s4] ss:$0 sm:$0xff] }
  0xc8   : > { %v703_v34 = vadd.f32 %v702_v30, %v674_v31  ;;  %v903_v30 = vld [vmem:[#allocation7 + $0x18] sm:$0xff]  ;;  %v1898_v31 = vld [vmem:[%s2073_s6] ss:$0 sm:$0xff] }
  0xca   : > { %v714_v36 = vmax.f32 %v703_v34, 0.0 }
  0xcc   : > { %811 = vmatmul.f32.vlgmr.msra.gmra.mxu3 %v714_v36  ;;  %v718_v56 = vrot.slane %v714_v36, 7 }
  0xcd   : > { %v676_v38 = vpop.f32.mrf.mxu0 }
  0xce   : > { %v705_v39 = vpop.f32.mrf.mxu1  ;;  %v677_v40 = vadd.f32 %v1452_v21, %v676_v38  ;;  %v900_v38 = vld [vmem:[#allocation7] sm:$0xff] }
  0xd0   : > { %v706_v43 = vadd.f32 %v705_v39, %v677_v40 }
  0xd2   : > { %v715_v44 = vmax.f32 %v706_v43, 0.0  ;;  %v1123_v43 = vld [vmem:[#allocation10 + $0x78] sm:$0xff] }
  0xd4   : > { %814 = vmatmul.f32.gmra.mxu3 %v715_v44  ;;  %v719_v42 = vrot.slane %v715_v44, 7  ;;  %v1122_v44 = vld [vmem:[#allocation10 + $0x70] sm:$0xff] }
  0xd5   : > { %v679_v45 = vpop.f32.mrf.mxu0 }
  0xd6   : > { %v708_v46 = vpop.f32.mrf.mxu1  ;;  %v680_v47 = vadd.f32 %v1452_v21, %v679_v45  ;;  %v724_v58 = vsel %vm609_vm0, %v718_v56, %v719_v42 }
  0xd8   : > { %v709_v48 = vadd.f32 %v708_v46, %v680_v47  ;;  %v1121_v47 = vld [vmem:[#allocation10 + $0x68] sm:$0xff] }
  0xda   : > { %v716_v50 = vmax.f32 %v709_v48, 0.0 }
  0xdc   : > { %817 = vmatmul.f32.gmra.mxu3 %v716_v50  ;;  %v720_v59 = vrot.slane %v716_v50, 7 }
  0xdd   : > { %v682_v51 = vpop.f32.mrf.mxu0 }
  0xde   : > { %v711_v52 = vpop.f32.mrf.mxu1  ;;  %v683_v53 = vadd.f32 %v1452_v21, %v682_v51  ;;  %v723_v49 = vsel %vm609_vm0, %v719_v42, %v720_v59  ;;  %v906_v21 = vld [vmem:[#allocation7 + $0x30] sm:$0xff]  ;;  %v1120_v51 = vld [vmem:[#allocation10 + $0x60] sm:$0xff] }
  0xdf   : > { %945 = vmatpush.msrb.mxu1 %v906_v21 }
  0xe0   : > { %v712_v54 = vadd.f32 %v711_v52, %v683_v53 }
  0xe1   : > { %946 = vmatpush.msrb.mxu1 %v905_v23 }
  0xe2   : > { %v717_v55 = vmax.f32 %v712_v54, 0.0 }
  0xe3   : > { %947 = vmatpush.msrb.mxu1 %v904_v25 }
  0xe4   : > { %v721_v57 = vrot.slane %v717_v55, 7  ;;  %820 = vmatmul.f32.gmra.mxu3 %v717_v55 }
  0xe5   : > { %948 = vmatpush.msrb.mxu1 %v903_v30  ;;  %v1922_v30 = vld [vmem:[#allocation9 + $0xf8] sm:$0xff] }
  0xe6   : > { %v725_v28 = vsel %vm609_vm0, %v721_v57, %v718_v56  ;;  %v722_v60 = vsel %vm609_vm0, %v720_v59, %v721_v57  ;;  %v1119_v56 = vld [vmem:[#allocation10 + $0x58] sm:$0xff]  ;;  %v1118_v57 = vld [vmem:[#allocation10 + $0x50] sm:$0xff]  ;;  %v1117_v59 = vld [vmem:[#allocation10 + $0x48] sm:$0xff]  ;;  %1075 = vmatpush.msra.mxu0 %v1922_v30 }
  0xe7   : > { %1357 = vmatmul.msk.f32.vlgmr.msra.gmra.mxu2 %vm614_vm1, %v725_v28  ;;  %949 = vmatpush.msrb.mxu1 %v902_v33  ;;  %v1931_v33 = vld [vmem:[#allocation9 + $0xe0] sm:$0xff] }
  0xe9   : > { %v865_v22 = vpop.f32.mrf.mxu0  ;;  %950 = vmatpush.msrb.mxu1 %v901_v35  ;;  %v1937_v35 = vld [vmem:[#allocation9 + $0xd0] sm:$0xff] }
  0xea   : > { %v866_v37 = vadd.f32 %v1898_v31, %v865_v22 }
  0xeb   : > { %951 = vmatpush.msrb.mxu1 %v900_v38  ;;  %v1946_v38 = vld [vmem:[#allocation9 + $0xb8] sm:$0xff] }
  0xed   : > { %1128 = vmatpush.msra.mxu1 %v1123_v43  ;;  %v1959_v43 = vld [vmem:[#allocation9 + $0x98] sm:$0xff] }
  0xef   : > { %785 = vmatmul.f32.gmra.mxu2 %v724_v58  ;;  %1129 = vmatpush.msra.mxu1 %v1122_v44  ;;  %v1962_v44 = vld [vmem:[#allocation9 + $0x90] sm:$0xff] }
  0xf1   : > { %v868_v39 = vpop.f32.mrf.mxu0  ;;  %1130 = vmatpush.msra.mxu1 %v1121_v47  ;;  %v1024_v47 = vld [vmem:[#allocation9 + $0x70] sm:$0xff] }
  0xf2   : > { %v869_v53 = vadd.f32 %v1898_v31, %v868_v39  ;;  %v1949_v39 = vld [vmem:[#allocation9 + $0xb0] sm:$0xff] }
  0xf3   : > { %1131 = vmatpush.msra.mxu1 %v1120_v51  ;;  %v1022_v51 = vld [vmem:[#allocation9 + $0x60] sm:$0xff] }
  0xf5   : > { %1132 = vmatpush.msra.mxu1 %v1119_v56  ;;  %v1017_v56 = vld [vmem:[#allocation9 + $0x38] sm:$0xff] }
  0xf7   : > { %1358 = vmatmul.msk.f32.gmra.mxu2 %vm614_vm1, %v723_v49  ;;  %1133 = vmatpush.msra.mxu1 %v1118_v57  ;;  %v1016_v57 = vld [vmem:[#allocation9 + $0x30] sm:$0xff] }
  0xf9   : > { %v871_v55 = vpop.f32.mrf.mxu0  ;;  %1134 = vmatpush.msra.mxu1 %v1117_v59 }
  0xfa   : > { %v872_v29 = vadd.f32 %v1898_v31, %v871_v55  ;;  %v1018_v55 = vld [vmem:[#allocation9 + $0x40] sm:$0xff] }
  0xfb   : > { %1135 = vmatpush.msra.mxu1 %v1116_v61  ;;  %v1011_v61 = vld [vmem:[#allocation9 + $0x8] sm:$0xff] }
  0xfd   : > { %1136 = vmatpush.msra.mxu1 %v1115_v0 }
  0xff   : > { %791 = vmatmul.f32.gmra.mxu2 %v722_v60  ;;  %1137 = vmatpush.msra.mxu1 %v1114_v1 }
 0x101   : > { %v874_v4 = vpop.f32.mrf.mxu0  ;;  %1138 = vmatpush.msra.mxu1 %v1113_v5 }
 0x102   : > { %v875_v11 = vadd.f32 %v1898_v31, %v874_v4  ;;  %v1924_v31 = vld [vmem:[#allocation9 + $0xf0] sm:$0xff] }
 0x103   : > { %1139 = vmatpush.msra.mxu1 %v1112_v9  ;;  %1076 = vmatpush.msra.mxu0 %v1924_v31 }
 0x105   : > { %1140 = vmatpush.msra.mxu1 %v1111_v13 }
 0x107   : > { %1141 = vmatpush.msra.mxu1 %v1110_v14 }
 0x109   : > { %1142 = vmatpush.msra.mxu1 %v1109_v16 }
 0x10b   : > { %1143 = vmatpush.msra.mxu1 %v1108_v18 }
 0x14f   : > { %v812_v24 = vpop.f32.mrf.mxu3 }
 0x157   : > { %v815_v41 = vpop.f32.mrf.mxu3 }
 0x15f   : > { %v818_v42 = vpop.f32.mrf.mxu3 }
 0x167   : > { %v821_v8 = vpop.f32.mrf.mxu3 }
 0x16a   : > { %v783_v32 = vpop.f32.mrf.mxu2 }
 0x16b   : > { %v784_v34 = vadd.f32 %v1453_v26, %v783_v32  ;;  %v1929_v32 = vld [vmem:[#allocation9 + $0xe8] sm:$0xff] }
 0x16c   : > { %1077 = vmatpush.msra.mxu0 %v1929_v32 }
 0x16d   : > { %v813_v36 = vadd.f32 %v812_v24, %v784_v34  ;;  %v1934_v34 = vld [vmem:[#allocation9 + $0xd8] sm:$0xff] }
 0x16e   : > { %1078 = vmatpush.msra.mxu0 %v1931_v33 }
 0x16f   : > { %v824_v40 = vmax.f32 %v813_v36, 0.0  ;;  %v1941_v36 = vld [vmem:[#allocation9 + $0xc8] sm:$0xff] }
 0x170   : > { %1079 = vmatpush.msra.mxu0 %v1934_v34 }
 0x171   : > { %v877_v45 = vadd.f32 %v866_v37, %v824_v40  ;;  %v1943_v37 = vld [vmem:[#allocation9 + $0xc0] sm:$0xff]  ;;  %v1953_v40 = vld [vmem:[#allocation9 + $0xa8] sm:$0xff] }
 0x172   : > { %v786_v46 = vpop.f32.mrf.mxu2  ;;  %1080 = vmatpush.msra.mxu0 %v1937_v35 }
 0x173   : > { %v1901_v48 = vmax.f32 %v877_v45, 0.0  ;;  %v787_v50 = vadd.f32 %v1453_v26, %v786_v46  ;;  %v1025_v45 = vld [vmem:[#allocation9 + $0x78] sm:$0xff]  ;;  %v1965_v46 = vld [vmem:[#allocation9 + $0x88] sm:$0xff] }
 0x174   : > { %1081 = vmatpush.msra.mxu0 %v1941_v36  ;;  %1046 = vmatpush.msrb.mxu3 %v1025_v45 }
 0x175   : > { %v816_v52 = vadd.f32 %v815_v41, %v787_v50  ;;  %981 = vmatmul.f32.vlgmr.msrb.gmra.mxu2 %v1901_v48  ;;  %v885_v19 = vrot.slane %v1901_v48, 6  ;;  %v1955_v41 = vld [vmem:[#allocation9 + $0xa0] sm:$0xff]  ;;  %v1023_v50 = vld [vmem:[#allocation9 + $0x68] sm:$0xff] }
 0x176   : > { %1082 = vmatpush.msra.mxu0 %v1943_v37  ;;  %1047 = vmatpush.msrb.mxu3 %v1024_v47 }
 0x177   : > { %v825_v54 = vmax.f32 %v816_v52, 0.0  ;;  %v1021_v52 = vld [vmem:[#allocation9 + $0x58] sm:$0xff] }
 0x178   : > { %1083 = vmatpush.msra.mxu0 %v1946_v38  ;;  %1048 = vmatpush.msrb.mxu3 %v1023_v50 }
 0x179   : > { %v878_v28 = vadd.f32 %v869_v53, %v825_v54  ;;  %v1020_v53 = vld [vmem:[#allocation9 + $0x50] sm:$0xff]  ;;  %v1019_v54 = vld [vmem:[#allocation9 + $0x48] sm:$0xff] }
 0x17a   : > { %v789_v58 = vpop.f32.mrf.mxu2  ;;  %1084 = vmatpush.msra.mxu0 %v1949_v39  ;;  %1049 = vmatpush.msrb.mxu3 %v1022_v51 }
 0x17b   : > { %v882_v49 = vmax.f32 %v878_v28, 0.0  ;;  %v790_v60 = vadd.f32 %v1453_v26, %v789_v58  ;;  %v1015_v28 = vld [vmem:[#allocation9 + $0x28] sm:$0xff]  ;;  %v1013_v58 = vld [vmem:[#allocation9 + $0x18] sm:$0xff] }
 0x17c   : > { %1085 = vmatpush.msra.mxu0 %v1953_v40  ;;  %1050 = vmatpush.msrb.mxu3 %v1021_v52 }
 0x17d   : > { %v819_v62 = vadd.f32 %v818_v42, %v790_v60  ;;  %984 = vmatmul.f32.gmra.mxu2 %v882_v49  ;;  %v886_v22 = vrot.slane %v882_v49, 6  ;;  %v1014_v42 = vld [vmem:[#allocation9 + $0x20] sm:$0xff] }
 0x17e   : > { %1086 = vmatpush.msra.mxu0 %v1955_v41  ;;  %1051 = vmatpush.msrb.mxu3 %v1020_v53  ;;  %v1455_v60 = vld [vmem:[%s2075_s8] ss:$0 sm:$0xff] }
 0x17f   : > { %v826_v63 = vmax.f32 %v819_v62, 0.0  ;;  %v892_v23 = vsel %vm889_vm3, %v885_v19, %v886_v22  ;;  %v1010_v62 = vld [vmem:[#allocation9] sm:$0xff] }
 0x180   : > { %1087 = vmatpush.msra.mxu0 %v1959_v43  ;;  %1052 = vmatpush.msrb.mxu3 %v1019_v54 }
 0x181   : > { %v879_v2 = vadd.f32 %v872_v29, %v826_v63 }
 0x182   : > { %v792_v3 = vpop.f32.mrf.mxu2  ;;  %1088 = vmatpush.msra.mxu0 %v1962_v44  ;;  %1053 = vmatpush.msrb.mxu3 %v1018_v55 }
 0x183   : > { %v883_v6 = vmax.f32 %v879_v2, 0.0  ;;  %v793_v7 = vadd.f32 %v1453_v26, %v792_v3 }
 0x184   : > { %1089 = vmatpush.msra.mxu0 %v1965_v46  ;;  %1054 = vmatpush.msrb.mxu3 %v1017_v56 }
 0x185   : > { %v822_v10 = vadd.f32 %v821_v8, %v793_v7  ;;  %987 = vmatmul.f32.gmra.mxu2 %v883_v6  ;;  %v887_v24 = vrot.slane %v883_v6, 6 }
 0x186   : > { %1055 = vmatpush.msrb.mxu3 %v1016_v57 }
 0x187   : > { %v827_v12 = vmax.f32 %v822_v10, 0.0  ;;  %v891_v25 = vsel %vm889_vm3, %v886_v22, %v887_v24 }
 0x188   : > { %1056 = vmatpush.msrb.mxu3 %v1015_v28 }
 0x189   : > { %v880_v15 = vadd.f32 %v875_v11, %v827_v12 }
 0x18a   : > { %1057 = vmatpush.msrb.mxu3 %v1014_v42 }
 0x18b   : > { %v884_v17 = vmax.f32 %v880_v15, 0.0 }
 0x18c   : > { %1058 = vmatpush.msrb.mxu3 %v1013_v58 }
 0x18d   : > { %v888_v20 = vrot.slane %v884_v17, 6  ;;  %990 = vmatmul.f32.gmra.mxu2 %v884_v17 }
 0x18f   : > { %v893_v21 = vsel %vm889_vm3, %v888_v20, %v885_v19  ;;  %v890_v26 = vsel %vm889_vm3, %v887_v24, %v888_v20 }
 0x190   : > { %1359 = vmatmul.msk.f32.vlgmr.msrb.gmra.mxu1 %vm894_vm2, %v893_v21 }
 0x198   : > { %955 = vmatmul.f32.gmra.mxu1 %v892_v23 }
 0x1a0   : > { %1360 = vmatmul.msk.f32.gmra.mxu1 %vm894_vm2, %v891_v25  ;;  %v1180_v25 = vld [vmem:[%s2080_s13 + $0x78] sm:$0xff] }
 0x1a1   : > { %1185 = vmatpush.msra.mxu2 %v1180_v25 }
 0x1a8   : > { %961 = vmatmul.f32.gmra.mxu1 %v890_v26  ;;  %v1179_v26 = vld [vmem:[%s2080_s13 + $0x70] sm:$0xff] }
 0x1a9   : > { %1186 = vmatpush.msra.mxu2 %v1179_v26 }
 0x1b0   : > { %1144 = vmatmul.f32.vlgmr.msra.gmra.mxu1 %v1901_v48  ;;  %v1968_v48 = vld [vmem:[#allocation9 + $0x80] sm:$0xff] }
 0x1b1   : > { %1090 = vmatpush.msra.mxu0 %v1968_v48 }
 0x1b8   : > { %1147 = vmatmul.f32.gmra.mxu1 %v882_v49  ;;  %v1012_v49 = vld [vmem:[#allocation9 + $0x10] sm:$0xff] }
 0x1b9   : > { %1059 = vmatpush.msrb.mxu3 %v1012_v49 }
 0x1bb   : > { %1060 = vmatpush.msrb.mxu3 %v1011_v61 }
 0x1bd   : > { %1061 = vmatpush.msrb.mxu3 %v1010_v62 }
 0x1bf   : > { %1365 = vmatpush.msra.mxu3 %v1922_v30  ;;  %v1178_v30 = vld [vmem:[%s2080_s13 + $0x68] sm:$0xff] }
 0x1c0   : > { %1150 = vmatmul.f32.gmra.mxu1 %v883_v6  ;;  %1187 = vmatpush.msra.mxu2 %v1178_v30 }
 0x1c1   : > { %1366 = vmatpush.msra.mxu3 %v1924_v31  ;;  %v1176_v31 = vld [vmem:[%s2080_s13 + $0x58] sm:$0xff] }
 0x1c2   : > { %1188 = vmatpush.msra.mxu2 %v1177_v27 }
 0x1c3   : > { %1367 = vmatpush.msra.mxu3 %v1929_v32  ;;  %v1175_v32 = vld [vmem:[%s2080_s13 + $0x50] sm:$0xff] }
 0x1c4   : > { %1189 = vmatpush.msra.mxu2 %v1176_v31 }
 0x1c5   : > { %1368 = vmatpush.msra.mxu3 %v1931_v33  ;;  %v1174_v33 = vld [vmem:[%s2080_s13 + $0x48] sm:$0xff] }
 0x1c6   : > { %1190 = vmatpush.msra.mxu2 %v1175_v32 }
 0x1c7   : > { %1369 = vmatpush.msra.mxu3 %v1934_v34  ;;  %v1173_v34 = vld [vmem:[%s2080_s13 + $0x40] sm:$0xff] }
 0x1c8   : > { %1153 = vmatmul.f32.gmra.mxu1 %v884_v17  ;;  %1191 = vmatpush.msra.mxu2 %v1174_v33 }
 0x1c9   : > { %1370 = vmatpush.msra.mxu3 %v1937_v35  ;;  %v1172_v35 = vld [vmem:[%s2080_s13 + $0x38] sm:$0xff] }
 0x1ca   : > { %1192 = vmatpush.msra.mxu2 %v1173_v34 }
 0x1cb   : > { %1371 = vmatpush.msra.mxu3 %v1941_v36  ;;  %v1171_v36 = vld [vmem:[%s2080_s13 + $0x30] sm:$0xff] }
 0x1cc   : > { %1193 = vmatpush.msra.mxu2 %v1172_v35 }
 0x1cd   : > { %1372 = vmatpush.msra.mxu3 %v1943_v37  ;;  %v1170_v37 = vld [vmem:[%s2080_s13 + $0x28] sm:$0xff] }
 0x1ce   : > { %1194 = vmatpush.msra.mxu2 %v1171_v36 }
 0x1cf   : > { %1373 = vmatpush.msra.mxu3 %v1946_v38  ;;  %v1169_v38 = vld [vmem:[%s2080_s13 + $0x20] sm:$0xff] }
 0x1d0   : > { %1195 = vmatpush.msra.mxu2 %v1170_v37 }
 0x1d1   : > { %1374 = vmatpush.msra.mxu3 %v1949_v39  ;;  %v1168_v39 = vld [vmem:[%s2080_s13 + $0x18] sm:$0xff] }
 0x1d2   : > { %1196 = vmatpush.msra.mxu2 %v1169_v38 }
 0x1d3   : > { %1375 = vmatpush.msra.mxu3 %v1953_v40  ;;  %v1167_v40 = vld [vmem:[%s2080_s13 + $0x10] sm:$0xff] }
 0x1d4   : > { %1197 = vmatpush.msra.mxu2 %v1168_v39 }
 0x1d5   : > { %1376 = vmatpush.msra.mxu3 %v1955_v41  ;;  %v1166_v41 = vld [vmem:[%s2080_s13 + $0x8] sm:$0xff] }
 0x1d6   : > { %1198 = vmatpush.msra.mxu2 %v1167_v40 }
 0x1d7   : > { %1377 = vmatpush.msra.mxu3 %v1959_v43  ;;  %v1165_v43 = vld [vmem:[%s2080_s13] sm:$0xff] }
 0x1d8   : > { %1199 = vmatpush.msra.mxu2 %v1166_v41 }
 0x1d9   : > { %1378 = vmatpush.msra.mxu3 %v1962_v44  ;;  %v1457_v44 = vld [vmem:[%s2077_s10] ss:$0 sm:$0xff] }
 0x1da   : > { %1200 = vmatpush.msra.mxu2 %v1165_v43 }
 0x1db   : > { %1379 = vmatpush.msra.mxu3 %v1965_v46  ;;  %v1456_v46 = vld [vmem:[%s2079_s12] ss:$0 sm:$0xff] }
 0x1dd   : > { %1380 = vmatpush.msra.mxu3 %v1968_v48 }
 0x1f8   : > { %v982_v59 = vpop.f32.mrf.mxu2 }
 0x200   : > { %v985_v2 = vpop.f32.mrf.mxu2 }
 0x208   : > { %v988_v4 = vpop.f32.mrf.mxu2 }
 0x20d   : > { %v953_v29 = vpop.f32.mrf.mxu1 }
 0x20e   : > { %v954_v63 = vadd.f32 %v1455_v60, %v953_v29 }
 0x210   : > { %v983_v0 = vadd.f32 %v982_v59, %v954_v63  ;;  %v991_v9 = vpop.f32.mrf.mxu2 }
 0x212   : > { %v994_v1 = vmax.f32 %v983_v0, 0.0 }
 0x214   : > { %1091 = vmatmul.f32.vlgmr.msra.gmra.mxu0 %v994_v1  ;;  %v998_v13 = vrot.slane %v994_v1, 6 }
 0x215   : > { %v956_v3 = vpop.f32.mrf.mxu1 }
 0x216   : > { %v957_v7 = vadd.f32 %v1455_v60, %v956_v3 }
 0x218   : > { %v986_v11 = vadd.f32 %v985_v2, %v957_v7 }
 0x21a   : > { %v995_v15 = vmax.f32 %v986_v11, 0.0 }
 0x21c   : > { %v999_v19 = vrot.slane %v995_v15, 6 }
 0x21d   : > { %v959_v5 = vpop.f32.mrf.mxu1 }
 0x21e   : > { %v960_v16 = vadd.f32 %v1455_v60, %v959_v5  ;;  %v1004_v21 = vsel %vm889_vm3, %v998_v13, %v999_v19 }
 0x220   : > { %v989_v18 = vadd.f32 %v988_v4, %v960_v16 }
 0x222   : > { %v996_v20 = vmax.f32 %v989_v18, 0.0 }
 0x224   : > { %v1000_v22 = vrot.slane %v996_v20, 6 }
 0x225   : > { %v962_v6 = vpop.f32.mrf.mxu1 }
 0x226   : > { %v963_v8 = vadd.f32 %v1455_v60, %v962_v6  ;;  %v1003_v23 = vsel %vm889_vm3, %v999_v19, %v1000_v22 }
 0x228   : > { %v992_v10 = vadd.f32 %v991_v9, %v963_v8 }
 0x22a   : > { %v997_v12 = vmax.f32 %v992_v10, 0.0 }
 0x22c   : > { %v1001_v14 = vrot.slane %v997_v12, 6 }
 0x22d   : > { %v1145_v48 = vpop.f32.mrf.mxu1 }
 0x22e   : > { %v1005_v17 = vsel %vm889_vm3, %v1001_v14, %v998_v13  ;;  %v1002_v24 = vsel %vm889_vm3, %v1000_v22, %v1001_v14  ;;  %v1146_v52 = vadd.f32 %v1456_v46, %v1145_v48 }
 0x22f   : > { %1361 = vmatmul.msk.f32.vlgmr.msrb.gmra.mxu3 %vm894_vm2, %v1005_v17 }
 0x235   : > { %v1148_v42 = vpop.f32.mrf.mxu1 }
 0x236   : > { %v1149_v60 = vadd.f32 %v1456_v46, %v1148_v42 }
 0x237   : > { %1065 = vmatmul.f32.gmra.mxu3 %v1004_v21 }
 0x23d   : > { %v1151_v29 = vpop.f32.mrf.mxu1 }
 0x23e   : > { %v1152_v3 = vadd.f32 %v1456_v46, %v1151_v29 }
 0x23f   : > { %1362 = vmatmul.msk.f32.gmra.mxu3 %vm894_vm2, %v1003_v23 }
 0x245   : > { %v1154_v8 = vpop.f32.mrf.mxu1 }
 0x246   : > { %v1155_v11 = vadd.f32 %v1456_v46, %v1154_v8 }
 0x247   : > { %1071 = vmatmul.f32.gmra.mxu3 %v1002_v24 }
 0x24f   : > { %1094 = vmatmul.f32.vlgmr.msra.gmra.mxu3 %v995_v15  ;;  %v1458_v15 = vld [vmem:[%s2081_s14] ss:$0 sm:$0xff] }
 0x257   : > { %1097 = vmatmul.f32.gmra.mxu3 %v996_v20 }
 0x25f   : > { %1100 = vmatmul.f32.gmra.mxu3 %v997_v12 }
 0x291   : > { %v1092_v50 = vpop.f32.mrf.mxu0 }
 0x2b2   : > { %v1063_v45 = vpop.f32.mrf.mxu3 }
 0x2b3   : > { %v1064_v47 = vadd.f32 %v1457_v44, %v1063_v45 }
 0x2b5   : > { %v1093_v51 = vadd.f32 %v1092_v50, %v1064_v47 }
 0x2b7   : > { %v1104_v53 = vmax.f32 %v1093_v51, 0.0 }
 0x2b9   : > { %v1157_v54 = vadd.f32 %v1146_v52, %v1104_v53 }
 0x2ba   : > { %v1066_v55 = vpop.f32.mrf.mxu3 }
 0x2bb   : > { %v1161_v56 = vmax.f32 %v1157_v54, 0.0  ;;  %v1067_v58 = vadd.f32 %v1457_v44, %v1066_v55 }
 0x2bd   : > { %1201 = vmatmul.f32.vlgmr.msra.gmra.mxu2 %v1161_v56 }
 0x2c2   : > { %v1069_v57 = vpop.f32.mrf.mxu3 }
 0x2c3   : > { %v1070_v63 = vadd.f32 %v1457_v44, %v1069_v57 }
 0x2ca   : > { %v1072_v28 = vpop.f32.mrf.mxu3 }
 0x2cb   : > { %v1073_v6 = vadd.f32 %v1457_v44, %v1072_v28 }
 0x2d2   : > { %v1095_v59 = vpop.f32.mrf.mxu3 }
 0x2d3   : > { %v1096_v49 = vadd.f32 %v1095_v59, %v1067_v58 }
 0x2d5   : > { %v1105_v61 = vmax.f32 %v1096_v49, 0.0 }
 0x2d7   : > { %v1158_v62 = vadd.f32 %v1149_v60, %v1105_v61 }
 0x2d9   : > { %v1162_v0 = vmax.f32 %v1158_v62, 0.0 }
 0x2da   : > { %v1098_v1 = vpop.f32.mrf.mxu3 }
 0x2db   : > { %v1099_v2 = vadd.f32 %v1098_v1, %v1070_v63  ;;  %1204 = vmatmul.f32.gmra.mxu2 %v1162_v0 }
 0x2dd   : > { %v1106_v4 = vmax.f32 %v1099_v2, 0.0 }
 0x2df   : > { %v1159_v5 = vadd.f32 %v1152_v3, %v1106_v4 }
 0x2e1   : > { %v1163_v7 = vmax.f32 %v1159_v5, 0.0 }
 0x2e2   : > { %v1101_v9 = vpop.f32.mrf.mxu3 }
 0x2e3   : > { %v1102_v10 = vadd.f32 %v1101_v9, %v1073_v6  ;;  %1207 = vmatmul.f32.gmra.mxu2 %v1163_v7 }
 0x2e5   : > { %v1107_v12 = vmax.f32 %v1102_v10, 0.0 }
 0x2e7   : > { %v1160_v13 = vadd.f32 %v1155_v11, %v1107_v12 }
 0x2e9   : > { %v1164_v14 = vmax.f32 %v1160_v13, 0.0 }
 0x2eb   : > { %1210 = vmatmul.f32.gmra.mxu2 %v1164_v14 }
 0x340   : > { %v1202_v16 = vpop.f32.mrf.mxu2 }
 0x341   : > { %v1203_v17 = vadd.f32 %v1458_v15, %v1202_v16 }
 0x343   : > { %1214 = vst [vmem:[%s596_s21] sm:$0xff] %v1203_v17 }
 0x35e   : > { %v1205_v18 = vpop.f32.mrf.mxu2 }
 0x35f   : > { %v1206_v19 = vadd.f32 %v1458_v15, %v1205_v18 }
 0x361   : > { %1215 = vst [vmem:[%s596_s21 + $0x8] sm:$0xff] %v1206_v19 }
 0x366   : > { %v1208_v20 = vpop.f32.mrf.mxu2 }
 0x367   : > { %v1209_v21 = vadd.f32 %v1458_v15, %v1208_v20 }
 0x369   : > { %1216 = vst [vmem:[%s596_s21 + $0x10] sm:$0xff] %v1209_v21 }
 0x36e   : > { %v1211_v22 = vpop.f32.mrf.mxu2 }
 0x36f   : > { %v1212_v23 = vadd.f32 %v1458_v15, %v1211_v22 }
 0x371   : > { %1217 = vst [vmem:[%s596_s21 + $0x18] sm:$0xff] %v1212_v23 }
 0x372 PF: > { %s29_s18 = sadd.s32 1, %s1661_s18  }
 0x373   : > { %p26_p7 = scmp.ge.s32.totalorder %s29_s18, 4  }
 0x375   :  { %28 = sbr.rel (!%p26_p7) target bundleno = 9 (0x9), region = 135 }
 0x37a   :  { %1240 = vsyncpa [#allocation3], 1 }
 0x37b   :  { %1242 = vsyncpa [#allocation3 + $0x1], 1 }
 0x37c   :  { %1243 = vsyncpa [#allocation5], 1 }
 0x37d   :  { %1244 = vsyncpa [#allocation8], 1 }
 0x37e   :  { %1245 = vsyncpa [#allocation11], 1 }

</bundles_post_ra>
